<compile_context>
chip_gen: v6e
topology: v6e:2x2x1
jax: 0.10.0
libtpu: 0.0.40
codegen_flags: <defaults>
</compile_context>

<pallas_src>
import jax
import jax.numpy as jnp
from jax.experimental import pallas as pl
from jax.experimental.pallas import tpu as pltpu


# ---------------------------------------------------------------------------
# Kernel bodies
# ---------------------------------------------------------------------------
def _fused_kernel(xy_ref, w1_ref, w2_ref, b_ref, out_ref):
    """Single-block path: whole problem resident in VMEM, norm in-kernel.

    xy : (N, 2D)   concat(x, y) on the feature axis
    w1 : (2D, 2D)  block_diag(Wx^T, Wy^T)   -> z = tanh(xy @ w1) == cat(h1,h2)
    w2 : (2D, D)   Wc^T                     -> out = z @ w2 + b
    """
    z = jnp.tanh(jnp.dot(xy_ref[...], w1_ref[...],
                         preferred_element_type=jnp.float32))
    z = z.astype(w2_ref.dtype)  # bf16 when enabled, no-op for f32
    out = (jnp.dot(z, w2_ref[...], preferred_element_type=jnp.float32)
           + b_ref[...].astype(jnp.float32))
    ss = jnp.sum(out * out)
    out_ref[...] = out * jax.lax.rsqrt(ss)


def _tiled_kernel(xy_ref, w1_ref, w2_ref, b_ref, out_ref, ss_ref):
    """Batch-tiled path: emits unnormalized tile + per-tile sum-of-squares."""
    z = jnp.tanh(jnp.dot(xy_ref[...], w1_ref[...],
                         preferred_element_type=jnp.float32))
    z = z.astype(w2_ref.dtype)
    out = (jnp.dot(z, w2_ref[...], preferred_element_type=jnp.float32)
           + b_ref[...].astype(jnp.float32))
    out_ref[...] = out
    # Per-tile sum of squares, splat into a full (8,128)-tile-legal block.
    ss_ref[...] = jnp.broadcast_to(jnp.sum(out * out), ss_ref.shape)


# ---------------------------------------------------------------------------
# Wrapper
# ---------------------------------------------------------------------------
def graph_comb(x, y, w_att_x, w_att_y, w_comb, b_comb, *,
               block_m=256, use_bf16=False):
    """x, y: (N, D) f32. w_att_*: (D, D) PyTorch layout (out, in).
    w_comb: (D, 2D) PyTorch layout. b_comb: (D,).

    block_m: batch tile for the tiled path (256 suits v6e/v7x MXU, 128 v5e).
    use_bf16: cast matmul operands to bf16 (f32 accumulation / epilogue).
    """
    N, D = x.shape
    f32 = jnp.float32

    # --- glue (plain JAX): fold the concat + both linear pairs into 2 dots ---
    xy = jnp.concatenate([x, y], axis=1).astype(f32)           # (N, 2D)
    zeros = jnp.zeros((D, D), f32)
    w1 = jnp.block([[w_att_x.T, zeros],
                    [zeros, w_att_y.T]]).astype(f32)           # (2D, 2D)
    w2 = w_comb.T.astype(f32)                                  # (2D, D)
    b2d = b_comb.reshape(1, D).astype(f32)                     # bias stays f32

    if use_bf16:
        xy = xy.astype(jnp.bfloat16)
        w1 = w1.astype(jnp.bfloat16)
        w2 = w2.astype(jnp.bfloat16)

    # -------------------- tiny / non-divisible batch: single block ----------
    if N <= block_m or N % block_m != 0:
        # TODO(synk): pad+mask the batch to enable tiling for large, ragged N.
        vmem = pl.BlockSpec(memory_space=pltpu.MemorySpace.VMEM)
        return pl.pallas_call(
            _fused_kernel,
            out_shape=jax.ShapeDtypeStruct((N, D), f32),
            in_specs=[vmem, vmem, vmem, vmem],
            out_specs=vmem,
        )(xy, w1, w2, b2d)

    # -------------------- large batch: tiled, parallel over tiles -----------
    num_tiles = N // block_m
    out_unnorm, ss_parts = pl.pallas_call(
        _tiled_kernel,
        out_shape=(jax.ShapeDtypeStruct((N, D), f32),
                   jax.ShapeDtypeStruct((num_tiles, 8, 128), f32)),
        grid=(num_tiles,),
        in_specs=[
            pl.BlockSpec((block_m, 2 * D), lambda i: (i, 0)),   # xy tile
            pl.BlockSpec((2 * D, 2 * D), lambda i: (0, 0)),     # W1 resident
            pl.BlockSpec((2 * D, D), lambda i: (0, 0)),         # W2 resident
            pl.BlockSpec((1, D), lambda i: (0, 0)),             # bias resident
        ],
        out_specs=(
            pl.BlockSpec((block_m, D), lambda i: (i, 0)),       # unnormalized
            pl.BlockSpec((1, 8, 128), lambda i: (i, 0, 0)),     # per-tile ss
        ),
        compiler_params=pltpu.CompilerParams(
            dimension_semantics=("parallel",)),
    )(xy, w1, w2, b2d)

    # Global L2 norm cannot be applied per tile: finish with a cheap epilogue.
    ss = jnp.sum(ss_parts[:, 0, 0])
    return out_unnorm * jax.lax.rsqrt(ss)


# ---------------------------------------------------------------------------
# Pure-JAX reference (matches the PyTorch module)
# ---------------------------------------------------------------------------
def graph_comb_ref(x, y, w_att_x, w_att_y, w_comb, b_comb):
    h1 = jnp.tanh(x @ w_att_x.T)
    h2 = jnp.tanh(y @ w_att_y.T)
    out = jnp.concatenate([h1, h2], axis=1) @ w_comb.T + b_comb
    return out / jnp.linalg.norm(out)


if __name__ == "__main__":
    key = jax.random.PRNGKey(0)

    # ---- Case 1: tiny shapes matching the module (single-block path) -------
    N, D = 8, 32
    kx, ky, kwx, kwy, kwc, kb = jax.random.split(key, 6)
    x = jax.random.normal(kx, (N, D), dtype=jnp.float32)
    y = jax.random.normal(ky, (N, D), dtype=jnp.float32)
    w_att_x = jax.random.normal(kwx, (D, D), dtype=jnp.float32) * 0.1
    w_att_y = jax.random.normal(kwy, (D, D), dtype=jnp.float32) * 0.1
    w_comb = jax.random.normal(kwc, (D, 2 * D), dtype=jnp.float32) * 0.1
    b_comb = jax.random.normal(kb, (D,), dtype=jnp.float32) * 0.1

    out = jax.block_until_ready(
        graph_comb(x, y, w_att_x, w_att_y, w_comb, b_comb))
    ref = graph_comb_ref(x, y, w_att_x, w_att_y, w_comb, b_comb)
    assert jnp.allclose(out, ref, atol=1e-5, rtol=1e-5), "small-path mismatch"

    # ---- Case 2: larger batch exercises the tiled / split-norm path --------
    N2, D2 = 512, 128
    k2 = jax.random.split(key, 7)
    x2 = jax.random.normal(k2[0], (N2, D2), dtype=jnp.float32)
    y2 = jax.random.normal(k2[1], (N2, D2), dtype=jnp.float32)
    wx2 = jax.random.normal(k2[2], (D2, D2), dtype=jnp.float32) * 0.05
    wy2 = jax.random.normal(k2[3], (D2, D2), dtype=jnp.float32) * 0.05
    wc2 = jax.random.normal(k2[4], (D2, 2 * D2), dtype=jnp.float32) * 0.05
    bc2 = jax.random.normal(k2[5], (D2,), dtype=jnp.float32) * 0.05

    out2 = jax.block_until_ready(
        graph_comb(x2, y2, wx2, wy2, wc2, bc2, block_m=128))
    ref2 = graph_comb_ref(x2, y2, wx2, wy2, wc2, bc2)
    assert jnp.allclose(out2, ref2, atol=1e-5, rtol=1e-4), "tiled-path mismatch"

    # bf16 matmul operands, f32 accumulation/epilogue (loose relative check).
    out2_bf16 = jax.block_until_ready(
        graph_comb(x2, y2, wx2, wy2, wc2, bc2, block_m=128, use_bf16=True))
    rel = jnp.linalg.norm(out2_bf16 - ref2) / jnp.linalg.norm(ref2)
    assert rel < 5e-2, "bf16 path diverged"

    print("KERNEL_OK")
</pallas_src>

<mosaic_0001>
module attributes {stable_mosaic.version = 11 : i64} {
  func.func @_fused_kernel(%arg0: memref<8x64xf32, #tpu.memory_space<vmem>>, %arg1: memref<64x64xf32, #tpu.memory_space<vmem>>, %arg2: memref<64x32xf32, #tpu.memory_space<vmem>>, %arg3: memref<1x32xf32, #tpu.memory_space<vmem>>, %arg4: memref<8x32xf32, #tpu.memory_space<vmem>>) attributes {dimension_semantics = [], scalar_prefetch = 0 : i64, scratch_operands = 0 : i64, tpu.core_type = #tpu.core_type<tc>} {
    %c0 = arith.constant 0 : index
    %c0_0 = arith.constant 0 : index
    %0 = vector.load %arg0[%c0, %c0_0] : memref<8x64xf32, #tpu.memory_space<vmem>>, vector<8x64xf32>
    %c0_1 = arith.constant 0 : index
    %c0_2 = arith.constant 0 : index
    %1 = vector.load %arg1[%c0_1, %c0_2] : memref<64x64xf32, #tpu.memory_space<vmem>>, vector<64x64xf32>
    %cst = arith.constant dense<0.000000e+00> : vector<8x64xf32>
    %2 = tpu.matmul %0, %1, %cst {dimension_numbers = #tpu.dot_dimension_numbers<[1], [0], [0], [1], [0, 0, 1, 1], [], []>} : vector<8x64xf32>, vector<64x64xf32>, vector<8x64xf32> -> vector<8x64xf32>
    %3 = math.tanh %2 : vector<8x64xf32>
    %c0_3 = arith.constant 0 : index
    %c0_4 = arith.constant 0 : index
    %4 = vector.load %arg2[%c0_3, %c0_4] : memref<64x32xf32, #tpu.memory_space<vmem>>, vector<64x32xf32>
    %cst_5 = arith.constant dense<0.000000e+00> : vector<8x32xf32>
    %5 = tpu.matmul %3, %4, %cst_5 {dimension_numbers = #tpu.dot_dimension_numbers<[1], [0], [0], [1], [0, 0, 1, 1], [], []>} : vector<8x64xf32>, vector<64x32xf32>, vector<8x32xf32> -> vector<8x32xf32>
    %c0_6 = arith.constant 0 : index
    %c0_7 = arith.constant 0 : index
    %6 = vector.load %arg3[%c0_6, %c0_7] : memref<1x32xf32, #tpu.memory_space<vmem>>, vector<1x32xf32>
    %7 = vector.broadcast %6 : vector<1x32xf32> to vector<8x32xf32>
    %8 = arith.addf %5, %7 : vector<8x32xf32>
    %9 = arith.mulf %8, %8 : vector<8x32xf32>
    %10 = vector.shape_cast %9 : vector<8x32xf32> to vector<1x8x32xf32>
    %cst_8 = arith.constant dense<0.000000e+00> : vector<1xf32>
    %11 = vector.multi_reduction <add>, %10, %cst_8 [1, 2] : vector<1x8x32xf32> to vector<1xf32>
    %12 = vector.shape_cast %11 : vector<1xf32> to vector<1x1x1xf32>
    %13 = vector.extract %12[0, 0, 0] : f32 from vector<1x1x1xf32>
    %14 = math.rsqrt %13 : f32
    %15 = vector.broadcast %14 : f32 to vector<8x32xf32>
    %16 = arith.mulf %8, %15 : vector<8x32xf32>
    %c0_9 = arith.constant 0 : index
    %c0_10 = arith.constant 0 : index
    %17 = vector.load %arg4[%c0_9, %c0_10] : memref<8x32xf32, #tpu.memory_space<vmem>>, vector<8x32xf32>
    tpu.vector_store %arg4[%c0_9, %c0_10], %16 {strides = array<i32>} : memref<8x32xf32, #tpu.memory_space<vmem>>, vector<8x32xf32>,
    return
  }
}

</mosaic_0001>

<bundles_post_ra>
// kernel: tpu_custom_call.1
= control target key start
LH: loop header
LB: loop body
LE: loop exit
PB: predicated region body
PF: predicated region fallthrough
CT: control target
= control target key end

     0   :  { %v314_v1 = vmov 0.0   ;;  %vm315_vm0 = vmmov 0   ;;  %s403_s0 = inlined_call_operand.vmem [shape: f32[8,64], index: 0, kind: input, shape index: {}]   ;;  %s404_s1 = inlined_call_operand.vmem [shape: f32[64,64], index: 1, kind: input, shape index: {}]   ;;  %s405_s2 = inlined_call_operand.vmem [shape: f32[64,32], index: 2, kind: input, shape index: {}]   ;;  %s406_s3 = inlined_call_operand.vmem [shape: f32[1,32], index: 3, kind: input, shape index: {}]   ;;  %s407_s4 = inlined_call_operand.hbm [shape: f32[8,32], index: 4, kind: output, shape index: {}]  }
   0x1   :  { %v26_v0 = vld [vmem:[%s404_s1 + $0x38] sm:$0xff]  ;;  %243 = vmatprep.subr.mxu0 %v314_v1  ;;  %v25_v2 = vld [vmem:[%s404_s1 + $0x30] sm:$0xff]  ;;  %259 = vmatprep.mubr.msk.f32.mxu0 %vm315_vm0, %v314_v1  ;;  %v24_v3 = vld [vmem:[%s404_s1 + $0x28] sm:$0xff] }
   0x2   :  { %244 = vmatpush3.msra.mxu0 %v26_v0  ;;  %262 = vmatprep.subr.mxu1 %v314_v1 }
   0x3   :  { %245 = vmatprep.subr.mxu0 %v314_v1  ;;  %278 = vmatprep.mubr.msk.f32.mxu1 %vm315_vm0, %v314_v1 }
   0x4   :  { %9 = vsyncpa [#allocation3], 0  ;;  %246 = vmatpush3.msra.mxu0 %v25_v2  ;;  %v23_v4 = vld [vmem:[%s404_s1 + $0x20] sm:$0xff]  ;;  %v22_v5 = vld [vmem:[%s404_s1 + $0x18] sm:$0xff]  ;;  %vm27_vm1 = vcmask 523264   ;;  %vm191_vm2 = vcmask 261120  }
   0x5   :  { %247 = vmatprep.subr.mxu0 %v314_v1  ;;  %v21_v6 = vld [vmem:[%s404_s1 + $0x10] sm:$0xff]  ;;  %v20_v7 = vld [vmem:[%s404_s1 + $0x8] sm:$0xff]  ;;  %v19_v8 = vld [vmem:[%s404_s1] sm:$0xff] }
   0x6   :  { %248 = vmatpush3.msra.mxu0 %v24_v3  ;;  %v18_v9 = vld [vmem:[%s403_s0] sm:$0xff]  ;;  %v109_v10 = vld [vmem:[%s405_s2 + $0x38] sm:$0xff]  ;;  %v108_v11 = vld [vmem:[%s405_s2 + $0x30] sm:$0xff] }
   0x7   :  { %249 = vmatprep.subr.mxu0 %v314_v1  ;;  %263 = vmatpush3.msra.mxu1 %v109_v10  ;;  %v107_v12 = vld [vmem:[%s405_s2 + $0x28] sm:$0xff]  ;;  %v106_v13 = vld [vmem:[%s405_s2 + $0x20] sm:$0xff]  ;;  %v105_v14 = vld [vmem:[%s405_s2 + $0x18] sm:$0xff] }
   0x8   :  { %250 = vmatpush3.msra.mxu0 %v23_v4  ;;  %264 = vmatprep.subr.mxu1 %v314_v1  ;;  %v104_v15 = vld [vmem:[%s405_s2 + $0x10] sm:$0xff]  ;;  %v103_v16 = vld [vmem:[%s405_s2 + $0x8] sm:$0xff]  ;;  %v102_v17 = vld [vmem:[%s405_s2] sm:$0xff] }
   0x9   :  { %251 = vmatprep.subr.mxu0 %v314_v1  ;;  %265 = vmatpush3.msra.mxu1 %v108_v11  ;;  %v223_v21 = vld [vmem:[%s406_s3] ss:$0 sm:$0xff]  ;;  %s316_s3 = smov [#allocation2]  }
   0xa   :  { %252 = vmatpush3.msra.mxu0 %v22_v5  ;;  %266 = vmatprep.subr.mxu1 %v314_v1  ;;  %s214_s23 = sshll.u32 %s316_s3, 4  ;;  %s215_s23 = int_to_ptr.vmem [resolvable:$true] %s214_s23 }
   0xb   :  { %253 = vmatprep.subr.mxu0 %v314_v1  ;;  %267 = vmatpush3.msra.mxu1 %v107_v12  ;;  %s292_s25 = scalar_lea.vmem %s215_s23, 128  ;;  %p297_p1 = scmp.lt.s32.totalorder %s215_s23, %s215_s23 }
   0xc   :  { %254 = vmatpush3.msra.mxu0 %v21_v6  ;;  %268 = vmatprep.subr.mxu1 %v314_v1  ;;  %p293_p0 = scmp.ne.s32.totalorder %s215_s23, %s292_s25  ;;  %p298_p2 = scmp.lt.s32.totalorder %s292_s25, %s292_s25 }
   0xd   :  { %255 = vmatprep.subr.mxu0 %v314_v1  ;;  %269 = vmatpush3.msra.mxu1 %v106_v13 }
   0xe   :  { %256 = vmatpush3.msra.mxu0 %v20_v7  ;;  %270 = vmatprep.subr.mxu1 %v314_v1  ;;  %p299_p3 = por %p298_p2, %p297_p1 }
   0xf   :  { %257 = vmatprep.subr.mxu0 %v314_v1  ;;  %271 = vmatpush3.msra.mxu1 %v105_v14 }
  0x10   :  { %258 = vmatpush3.msra.mxu0 %v19_v8  ;;  %272 = vmatprep.subr.mxu1 %v314_v1  ;;  %p300_p4 = pnand %p299_p3, %p293_p0 }
  0x11   :  { %260 = vmatmul.mubr.msk.f32.vlgmr.msra.gmra.mxu0 %vm27_vm1, %v18_v9  ;;  %273 = vmatpush3.msra.mxu1 %v104_v15 }
  0x12   :  { %274 = vmatprep.subr.mxu1 %v314_v1 }
  0x13   :  { %275 = vmatpush3.msra.mxu1 %v103_v16 }
  0x14   :  { %276 = vmatprep.subr.mxu1 %v314_v1 }
  0x15   :  { %277 = vmatpush3.msra.mxu1 %v102_v17 }
  0xd1   :  { %v97_v18 = vpop.f32.mrf.mxu0 }
  0xd2   :  { %288 = vtanh.f32 %v97_v18 }
  0xd3   :  { %v261_v19 = vpop.f32.mrf.mxu0 }
  0xdf   :  { %v289_v20 = vpop.eup %288 }
  0xe0   :  { %279 = vmatmul.mubr.msk.f32.vlgmr.msra.gmra.mxu1 %vm27_vm1, %v289_v20 }
 0x1a0   :  { %v186_v22 = vpop.f32.mrf.mxu1 }
 0x1a1   :  { %v187_v23 = vadd.f32 %v223_v21, %v186_v22 }
 0x1a2   :  { %v280_v24 = vpop.f32.mrf.mxu1 }
 0x1a3   :  { %v190_v25 = vmul.f32 %v187_v23, %v187_v23 }
 0x1a5   :  { %v192_v26 = vsel %vm191_vm2, %v190_v25, 0.0 }
 0x1a6   :  { %193 = vadd.xlane.f32.xlu0 %v192_v26 }
 0x22f   :  { %v194_v27 = vpop.xlane.xlu0 %193 }
 0x230   :  { %v195_v28 = vrot.slane %v194_v27, 4 }
 0x232   :  { %v196_v29 = vadd.f32 %v195_v28, %v194_v27 }
 0x234   :  { %v197_v30 = vrot.slane %v196_v29, 2 }
 0x236   :  { %v198_v31 = vadd.f32 %v197_v30, %v196_v29 }
 0x238   :  { %v199_v32 = vrot.slane %v198_v31, 1 }
 0x23a   :  { %v200_v33 = vadd.f32 %v199_v32, %v198_v31 }
 0x23c   :  { %281 = vpush %v200_v33 }
 0x26d   :  { %s282_s2 = spop %281 }
 0x26e   :  { %v202_v34 = vstv %s282_s2 }
 0x26f   :  { %290 = vrsqrt.f32 %v202_v34 }
 0x27c   :  { %v291_v35 = vpop.eup %290 }
 0x27d   :  { %283 = vpush %v291_v35 }
 0x2ae   :  { %s284_s24 = spop %283 }
 0x2af   :  { %v205_v36 = vstv %s284_s24 }
 0x2b0   :  { %v206_v37 = vmul.f32 %v205_v36, %v187_v23 }
 0x2b2   :  { %207 = vst.msk [vmem:[#allocation2] sm:$0xff] %vm191_vm2, %v206_v37 }
 0x2b3   :  { %303 = shalt.err (!%p300_p4)
}
 0x2b4   :  { %217 = dma.vmem_to_hbm [thread:$0]  %s215_s23, 128, %s407_s4, [#allocation3]  }
 0x2b5   :  { %312 = dma.done.wait [#allocation3], 128  }
 0x2b6   :  { %313 = vsyncadd [#allocation3], 4294967168 }
 0x2b7   :  { %221 = vsyncpa [#allocation3], 1 }

</bundles_post_ra>
